<compile_context>
chip_gen: v7x
topology: tpu7x:2x2x1
jax: 0.10.0
libtpu: 0.0.40
codegen_flags: <defaults>
</compile_context>

<pallas_src>
import functools

import jax
import jax.numpy as jnp
from jax.experimental import pallas as pl
from jax.experimental.pallas import tpu as pltpu

_LANE = 128
_SUBLANE = 8


def _round_up(x, m):
    return (x + m - 1) // m * m


def _mlp_actor_kernel(x_ref,
                      w1_ref, b1_ref,
                      w2_ref, b2_ref,
                      w3_ref, b3_ref,
                      out_ref, *, act_limit):
    x = x_ref[...].astype(jnp.bfloat16)                     # (block_b, obs) -> bf16 MXU input

    h = jnp.dot(x, w1_ref[...],
                preferred_element_type=jnp.float32) + b1_ref[...]
    h = jnp.maximum(h, 0.0)                                  # ReLU, f32 on VPU

    h = jnp.dot(h.astype(jnp.bfloat16), w2_ref[...],
                preferred_element_type=jnp.float32) + b2_ref[...]
    h = jnp.maximum(h, 0.0)

    h = jnp.dot(h.astype(jnp.bfloat16), w3_ref[...],
                preferred_element_type=jnp.float32) + b3_ref[...]

    # act_limit * tanh(.) written bf16 to a lane-dense 128-wide padded slab.
    out_ref[...] = (act_limit * jnp.tanh(h)).astype(jnp.bfloat16)


def _resident_spec(shape):
    """Constant-index (VMEM-resident) block; single-buffered when supported."""
    const = lambda i: (0, 0)
    try:
        return pl.BlockSpec(shape, const, pipeline_mode=pl.Buffered(1))
    except Exception:  # older JAX without pipeline_mode / Buffered
        return pl.BlockSpec(shape, const)


def _choose_block_b(b):
    """Batch tile: sublane-rounded, >=2 grid steps when b > 128, capped at 1024."""
    b8 = _round_up(max(b, 1), _SUBLANE)
    if b8 <= _LANE:
        return b8                                            # one small tile, no 128-row padding
    return min(1024, _round_up(-(-b8 // 2), _SUBLANE))       # >=2 iterations for v7x megacore


def _vmem_limit_bytes(block_b, obs_dim, h1, h2, n_pad, obs_itemsize):
    io = 2 * block_b * obs_dim * obs_itemsize                # obs tile, double-buffered
    io += 2 * block_b * n_pad * 2                            # bf16 out tile, double-buffered
    wts = (obs_dim * h1 + h1 * h2 + h2 * n_pad) * 2          # bf16 resident weights
    bias = (h1 + h2 + n_pad) * 4                             # f32 resident biases
    total = io + wts + bias
    # 2x headroom (covers the fallback where weights end up double-buffered).
    return int(min(max(2 * total + (1 << 20), 4 << 20), 64 << 20))


def _call_kernel(x, params, act_limit, block_b):
    b_pad, obs_dim = x.shape
    h1 = params["w1"].shape[1]
    h2 = params["w2"].shape[1]
    n_pad = params["w3"].shape[1]                            # act_dim padded to 128

    kernel = functools.partial(_mlp_actor_kernel, act_limit=act_limit)
    vmem_limit = _vmem_limit_bytes(block_b, obs_dim, h1, h2, n_pad, x.dtype.itemsize)

    return pl.pallas_call(
        kernel,
        out_shape=jax.ShapeDtypeStruct((b_pad, n_pad), jnp.bfloat16),
        grid=(b_pad // block_b,),
        in_specs=[
            pl.BlockSpec((block_b, obs_dim), lambda i: (i, 0)),   # obs tile
            _resident_spec((obs_dim, h1)),
            _resident_spec((1, h1)),
            _resident_spec((h1, h2)),
            _resident_spec((1, h2)),
            _resident_spec((h2, n_pad)),
            _resident_spec((1, n_pad)),
        ],
        out_specs=pl.BlockSpec((block_b, n_pad), lambda i: (i, 0)),
        compiler_params=pltpu.CompilerParams(
            dimension_semantics=("parallel",),
            vmem_limit_bytes=vmem_limit,
        ),
    )(x, params["w1"], params["b1"], params["w2"], params["b2"],
      params["w3"], params["b3"])


def init_params(key, obs_dim, act_dim, hidden_sizes):
    """PyTorch nn.Linear default init: U(-1/sqrt(fan_in), +1/sqrt(fan_in)).

    Weights are stored transposed (in_features, out_features) and in bf16 for
    the MXU; biases stay f32. The last layer's output dim is zero-padded to a
    128-lane slab so the kernel's output store is lane-dense.
    """
    sizes = [obs_dim] + list(hidden_sizes) + [act_dim]
    n_layers = len(sizes) - 1
    params = {}
    for i in range(n_layers):
        din, dout = sizes[i], sizes[i + 1]
        key, kw, kb = jax.random.split(key, 3)
        bound = 1.0 / (din ** 0.5)
        w = jax.random.uniform(kw, (din, dout), jnp.float32, -bound, bound)
        b = jax.random.uniform(kb, (1, dout), jnp.float32, -bound, bound)
        if i == n_layers - 1:
            dpad = _round_up(max(dout, _LANE), _LANE)
            w = jnp.pad(w, ((0, 0), (0, dpad - dout)))
            b = jnp.pad(b, ((0, 0), (0, dpad - dout)))
        params[f"w{i + 1}"] = w.astype(jnp.bfloat16)
        params[f"b{i + 1}"] = b
    return params


@functools.partial(jax.jit, static_argnames=("act_dim", "act_limit"))
def mlp_actor_forward(obs, params, act_dim, act_limit):
    """JAX/Pallas equivalent of MLPActor.forward(obs) = act_limit * pi(obs)."""
    if not jnp.issubdtype(obs.dtype, jnp.floating):
        obs = obs.astype(jnp.float32)       # keep float inputs as-is; kernel casts to bf16
    squeeze = obs.ndim == 1
    if squeeze:
        obs = obs[None, :]
    b = obs.shape[0]

    block_b = _choose_block_b(b)
    b_pad = _round_up(b, block_b)
    if b_pad != b:
        obs = jnp.pad(obs, ((0, b_pad - b), (0, 0)))

    out = _call_kernel(obs, params, float(act_limit), block_b)
    # Slice the small (b, act_dim) result out of the bf16 slab, then upcast.
    out = out[:b, :act_dim].astype(jnp.float32)
    if squeeze:
        out = out[0]
    return out


def _reference_forward(obs, params, act_dim, act_limit):
    """Pure-JAX f32 reference (weights upcast) for a correctness check."""
    obs = obs.astype(jnp.float32)
    h = jnp.maximum(obs @ params["w1"].astype(jnp.float32) + params["b1"], 0.0)
    h = jnp.maximum(h @ params["w2"].astype(jnp.float32) + params["b2"], 0.0)
    h = h @ params["w3"].astype(jnp.float32) + params["b3"]
    return act_limit * jnp.tanh(h)[:, :act_dim]


if __name__ == "__main__":
    # Small deterministic example shapes consistent with the module.
    obs_dim = 16
    act_dim = 4
    hidden_sizes = (128, 128)
    act_limit = 2.0

    root = jax.random.PRNGKey(0)
    k_params, k_obs = jax.random.split(root)
    params = init_params(k_params, obs_dim, act_dim, hidden_sizes)

    # batch=64 (single tile), batch=200 (2-step grid, padded batch), batch=1.
    for batch in (64, 200, 1):
        k_obs, k = jax.random.split(k_obs)
        obs = jax.random.normal(k, (batch, obs_dim), jnp.float32)
        out = jax.block_until_ready(mlp_actor_forward(obs, params, act_dim, act_limit))
        assert out.shape == (batch, act_dim), out.shape
        assert bool(jnp.all(jnp.isfinite(out)))
        assert bool(jnp.all(jnp.abs(out) <= act_limit + 1e-3))
        ref = _reference_forward(obs, params, act_dim, act_limit)
        err = float(jnp.max(jnp.abs(out - ref)))
        assert err < 5e-2, err

    # 1-D single-observation path (the common online-inference case).
    k_obs, k = jax.random.split(k_obs)
    obs1 = jax.random.normal(k, (obs_dim,), jnp.float32)
    out1 = jax.block_until_ready(mlp_actor_forward(obs1, params, act_dim, act_limit))
    assert out1.shape == (act_dim,), out1.shape

    print("KERNEL_OK")
</pallas_src>

<mosaic_0001>
module attributes {stable_mosaic.version = 11 : i64} {
  func.func @_mlp_actor_kernel(%arg0: i32, %arg1: memref<64x16xf32, #tpu.memory_space<vmem>>, %arg2: memref<16x128xbf16, #tpu.memory_space<vmem>>, %arg3: memref<1x128xf32, #tpu.memory_space<vmem>>, %arg4: memref<128x128xbf16, #tpu.memory_space<vmem>>, %arg5: memref<1x128xf32, #tpu.memory_space<vmem>>, %arg6: memref<128x128xbf16, #tpu.memory_space<vmem>>, %arg7: memref<1x128xf32, #tpu.memory_space<vmem>>, %arg8: memref<64x128xbf16, #tpu.memory_space<vmem>>) attributes {dimension_semantics = [#tpu.dimension_semantics<parallel>], iteration_bounds = array<i64: 1>, scalar_prefetch = 0 : i64, scratch_operands = 0 : i64, tpu.core_type = #tpu.core_type<tc>, window_params = [{transform_indices = @transform_0, window_bounds = array<i64: 64, 16>}, {pipeline_mode = #tpu.pipeline_mode<synchronous>, transform_indices = @transform_1, window_bounds = array<i64: 16, 128>}, {pipeline_mode = #tpu.pipeline_mode<synchronous>, transform_indices = @transform_2, window_bounds = array<i64: 1, 128>}, {pipeline_mode = #tpu.pipeline_mode<synchronous>, transform_indices = @transform_3, window_bounds = array<i64: 128, 128>}, {pipeline_mode = #tpu.pipeline_mode<synchronous>, transform_indices = @transform_4, window_bounds = array<i64: 1, 128>}, {pipeline_mode = #tpu.pipeline_mode<synchronous>, transform_indices = @transform_5, window_bounds = array<i64: 128, 128>}, {pipeline_mode = #tpu.pipeline_mode<synchronous>, transform_indices = @transform_6, window_bounds = array<i64: 1, 128>}, {transform_indices = @transform_7, window_bounds = array<i64: 64, 128>}]} {
    %c0 = arith.constant 0 : index
    %c0_0 = arith.constant 0 : index
    %0 = vector.load %arg1[%c0, %c0_0] : memref<64x16xf32, #tpu.memory_space<vmem>>, vector<64x16xf32>
    %1 = arith.truncf %0 : vector<64x16xf32> to vector<64x16xbf16>
    %c0_1 = arith.constant 0 : index
    %c0_2 = arith.constant 0 : index
    %2 = vector.load %arg2[%c0_1, %c0_2] : memref<16x128xbf16, #tpu.memory_space<vmem>>, vector<16x128xbf16>
    %cst = arith.constant dense<0.000000e+00> : vector<64x128xf32>
    %3 = tpu.matmul %1, %2, %cst {dimension_numbers = #tpu.dot_dimension_numbers<[1], [0], [0], [1], [0, 0, 1, 1], [], []>} : vector<64x16xbf16>, vector<16x128xbf16>, vector<64x128xf32> -> vector<64x128xf32>
    %c0_3 = arith.constant 0 : index
    %c0_4 = arith.constant 0 : index
    %4 = vector.load %arg3[%c0_3, %c0_4] : memref<1x128xf32, #tpu.memory_space<vmem>>, vector<1x128xf32>
    %5 = vector.broadcast %4 : vector<1x128xf32> to vector<64x128xf32>
    %6 = arith.addf %3, %5 : vector<64x128xf32>
    %cst_5 = arith.constant 0.000000e+00 : f32
    %7 = vector.broadcast %cst_5 : f32 to vector<64x128xf32>
    %8 = arith.maximumf %6, %7 : vector<64x128xf32>
    %9 = arith.truncf %8 : vector<64x128xf32> to vector<64x128xbf16>
    %c0_6 = arith.constant 0 : index
    %c0_7 = arith.constant 0 : index
    %10 = vector.load %arg4[%c0_6, %c0_7] : memref<128x128xbf16, #tpu.memory_space<vmem>>, vector<128x128xbf16>
    %cst_8 = arith.constant dense<0.000000e+00> : vector<64x128xf32>
    %11 = tpu.matmul %9, %10, %cst_8 {dimension_numbers = #tpu.dot_dimension_numbers<[1], [0], [0], [1], [0, 0, 1, 1], [], []>} : vector<64x128xbf16>, vector<128x128xbf16>, vector<64x128xf32> -> vector<64x128xf32>
    %c0_9 = arith.constant 0 : index
    %c0_10 = arith.constant 0 : index
    %12 = vector.load %arg5[%c0_9, %c0_10] : memref<1x128xf32, #tpu.memory_space<vmem>>, vector<1x128xf32>
    %13 = vector.broadcast %12 : vector<1x128xf32> to vector<64x128xf32>
    %14 = arith.addf %11, %13 : vector<64x128xf32>
    %cst_11 = arith.constant 0.000000e+00 : f32
    %15 = vector.broadcast %cst_11 : f32 to vector<64x128xf32>
    %16 = arith.maximumf %14, %15 : vector<64x128xf32>
    %17 = arith.truncf %16 : vector<64x128xf32> to vector<64x128xbf16>
    %c0_12 = arith.constant 0 : index
    %c0_13 = arith.constant 0 : index
    %18 = vector.load %arg6[%c0_12, %c0_13] : memref<128x128xbf16, #tpu.memory_space<vmem>>, vector<128x128xbf16>
    %cst_14 = arith.constant dense<0.000000e+00> : vector<64x128xf32>
    %19 = tpu.matmul %17, %18, %cst_14 {dimension_numbers = #tpu.dot_dimension_numbers<[1], [0], [0], [1], [0, 0, 1, 1], [], []>} : vector<64x128xbf16>, vector<128x128xbf16>, vector<64x128xf32> -> vector<64x128xf32>
    %c0_15 = arith.constant 0 : index
    %c0_16 = arith.constant 0 : index
    %20 = vector.load %arg7[%c0_15, %c0_16] : memref<1x128xf32, #tpu.memory_space<vmem>>, vector<1x128xf32>
    %21 = vector.broadcast %20 : vector<1x128xf32> to vector<64x128xf32>
    %22 = arith.addf %19, %21 : vector<64x128xf32>
    %23 = math.tanh %22 : vector<64x128xf32>
    %cst_17 = arith.constant 2.000000e+00 : f32
    %24 = vector.broadcast %cst_17 : f32 to vector<64x128xf32>
    %25 = arith.mulf %24, %23 : vector<64x128xf32>
    %26 = arith.truncf %25 : vector<64x128xf32> to vector<64x128xbf16>
    %c0_18 = arith.constant 0 : index
    %c0_19 = arith.constant 0 : index
    %27 = vector.load %arg8[%c0_18, %c0_19] : memref<64x128xbf16, #tpu.memory_space<vmem>>, vector<64x128xbf16>
    tpu.vector_store %arg8[%c0_18, %c0_19], %26 {strides = array<i32>} : memref<64x128xbf16, #tpu.memory_space<vmem>>, vector<64x128xbf16>,
    return
  }
  func.func @transform_0(%arg0: i32) -> (i32, i32) {
    %c0_i32 = arith.constant 0 : i32
    %c0_i32_0 = arith.constant 0 : i32
    return %arg0, %c0_i32 : i32, i32
  }
  func.func @transform_1(%arg0: i32) -> (i32, i32) {
    %c0_i32 = arith.constant 0 : i32
    %c0_i32_0 = arith.constant 0 : i32
    %c0_i32_1 = arith.constant 0 : i32
    return %c0_i32, %c0_i32_0 : i32, i32
  }
  func.func @transform_2(%arg0: i32) -> (i32, i32) {
    %c0_i32 = arith.constant 0 : i32
    %c0_i32_0 = arith.constant 0 : i32
    %c0_i32_1 = arith.constant 0 : i32
    return %c0_i32, %c0_i32_0 : i32, i32
  }
  func.func @transform_3(%arg0: i32) -> (i32, i32) {
    %c0_i32 = arith.constant 0 : i32
    %c0_i32_0 = arith.constant 0 : i32
    %c0_i32_1 = arith.constant 0 : i32
    return %c0_i32, %c0_i32_0 : i32, i32
  }
  func.func @transform_4(%arg0: i32) -> (i32, i32) {
    %c0_i32 = arith.constant 0 : i32
    %c0_i32_0 = arith.constant 0 : i32
    %c0_i32_1 = arith.constant 0 : i32
    return %c0_i32, %c0_i32_0 : i32, i32
  }
  func.func @transform_5(%arg0: i32) -> (i32, i32) {
    %c0_i32 = arith.constant 0 : i32
    %c0_i32_0 = arith.constant 0 : i32
    %c0_i32_1 = arith.constant 0 : i32
    return %c0_i32, %c0_i32_0 : i32, i32
  }
  func.func @transform_6(%arg0: i32) -> (i32, i32) {
    %c0_i32 = arith.constant 0 : i32
    %c0_i32_0 = arith.constant 0 : i32
    %c0_i32_1 = arith.constant 0 : i32
    return %c0_i32, %c0_i32_0 : i32, i32
  }
  func.func @transform_7(%arg0: i32) -> (i32, i32) {
    %c0_i32 = arith.constant 0 : i32
    %c0_i32_0 = arith.constant 0 : i32
    return %arg0, %c0_i32 : i32, i32
  }
}

</mosaic_0001>

<bundles_post_ra>
// kernel: mlp_actor_forward.1
= control target key start
LH: loop header
LB: loop body
LE: loop exit
PB: predicated region body
PF: predicated region fallthrough
CT: control target
= control target key end

     0   :  { %12 = vsyncpa [#allocation3], 0  ;;  %s713_s24 = smov [#allocation2]   ;;  %s844_s0 = inlined_call_operand.vmem [shape: f32[64,16], index: 0, kind: input, shape index: {}]   ;;  %s845_s1 = inlined_call_operand.vmem [shape: bf16[16,128], index: 1, kind: input, shape index: {}]   ;;  %s846_s2 = inlined_call_operand.vmem [shape: f32[1,128], index: 2, kind: input, shape index: {}]   ;;  %s847_s3 = inlined_call_operand.vmem [shape: bf16[128,128], index: 3, kind: input, shape index: {}]   ;;  %s848_s4 = inlined_call_operand.vmem [shape: f32[1,128], index: 4, kind: input, shape index: {}]   ;;  %s849_s5 = inlined_call_operand.hbm [shape: bf16[128,128], index: 5, kind: input, shape index: {}]   ;;  %s850_s6 = inlined_call_operand.vmem [shape: f32[1,128], index: 6, kind: input, shape index: {}]   ;;  %s851_s7 = inlined_call_operand.vmem [shape: bf16[64,128], index: 7, kind: output, shape index: {}]  }
   0x1   :  { %s28_s25 = sshll.u32 %s713_s24, 4  ;;  %s689_s28 = scalar_lea.hbm %s849_s5, 1024  ;;  %s29_s25 = int_to_ptr.vmem [resolvable:$true] %s28_s25 }
   0x2   :  { %p690_p0 = scmp.ne.s32.totalorder %s849_s5, %s689_s28  ;;  %p693_p1 = scmp.lt.u32.totalorder %s689_s28, %s849_s5 }
   0x4   :  { %p695_p2 = pnand %p693_p1, %p690_p0 }
   0x6   :  { %698 = shalt.err (!%p695_p2)
}
   0x7   :  { %s699_s10 = scalar_lea.vmem %s29_s25, 1024  ;;  %p704_p4 = scmp.lt.s32.totalorder %s29_s25, %s29_s25 }
   0x8   :  { %p700_p3 = scmp.ne.s32.totalorder %s29_s25, %s699_s10  ;;  %p705_p5 = scmp.lt.s32.totalorder %s699_s10, %s699_s10 }
   0xa   :  { %p706_p6 = por %p705_p5, %p704_p4 }
   0xc   :  { %p707_p7 = pnand %p706_p6, %p700_p3 }
   0xe   :  { %710 = shalt.err (!%p707_p7)
}
   0xf   :  { %s714_s11 = smov 64   ;;  %s715_s12 = smov 4  }
  0x10   :  { %34 = dma.hbm_to_vmem [thread:$0]  %s849_s5, 1024, %s29_s25, [#allocation3], %s714_s11, %s714_s11, %s715_s12  }
  0x11   :  { %711 = dma.done.wait [#allocation3], 1024  }
  0x12   :  { %712 = vsyncadd [#allocation3], 4294966272  ;;  %v656_v0 = vld [vmem:[%s845_s1] sm:$0xff]   ;;  %v42_v2 = vld [vmem:[%s844_s0 + $0x8] sm:$0xff]  ;;  %vm68_vm0 = vcmask 130048  }
  0x13   :  { %v41_v1 = vld [vmem:[%s844_s0] sm:$0xff]  ;;  %v43_v3 = vld [vmem:[%s844_s0 + $0x10] sm:$0xff]  ;;  %595 = vmatprep.subr.bf16.mxu0 %v656_v0  ;;  %v44_v5 = vld [vmem:[%s844_s0 + $0x18] sm:$0xff] }
  0x14   :  { %v49_v4 = vpack.c.bf16 %v42_v2, %v41_v1  ;;  %v45_v6 = vld [vmem:[%s844_s0 + $0x20] sm:$0xff]  ;;  %v46_v7 = vld [vmem:[%s844_s0 + $0x28] sm:$0xff]  ;;  %596 = vmatpush3.bf16.msra.mxu0 %v656_v0  ;;  %v50_v8 = vpack.c.bf16 %v44_v5, %v43_v3  ;;  %v47_v12 = vld [vmem:[%s844_s0 + $0x30] sm:$0xff] }
  0x15   :  { %v51_v9 = vpack.c.bf16 %v46_v7, %v45_v6  ;;  %v657_v10 = vld [vmem:[%s847_s3] sm:$0xff]   ;;  %v658_v11 = vld [vmem:[%s847_s3 + $0x8] sm:$0xff]   ;;  %v48_v13 = vld [vmem:[%s844_s0 + $0x38] sm:$0xff] }
  0x16   :  { %597 = vmatprep.mubr.msk.bf16.mxu0 %vm68_vm0, %v49_v4  ;;  %605 = vmatprep.subr.bf16.mxu1 %v657_v10  ;;  %v659_v14 = vld [vmem:[%s847_s3 + $0x10] sm:$0xff]   ;;  %v52_v15 = vpack.c.bf16 %v48_v13, %v47_v12  ;;  %v660_v16 = vld [vmem:[%s847_s3 + $0x18] sm:$0xff]   ;;  %v661_v17 = vld [vmem:[%s847_s3 + $0x20] sm:$0xff]  }
  0x17   :  { %598 = vmatmul.mubr.msk.bf16.vlgmr.msra.gmra.mrb[0].mxu0 %vm68_vm0, %v50_v8  ;;  %606 = vmatpush3.bf16.msra.mxu1 %v657_v10  ;;  %v662_v18 = vld [vmem:[%s847_s3 + $0x28] sm:$0xff]   ;;  %v663_v19 = vld [vmem:[%s847_s3 + $0x30] sm:$0xff]   ;;  %v664_v20 = vld [vmem:[%s847_s3 + $0x38] sm:$0xff]  }
  0x18   :  { %601 = vmatprep.mubr.msk.bf16.mxu0 %vm68_vm0, %v51_v9  ;;  %607 = vmatprep.subr.bf16.mxu1 %v658_v11  ;;  %v665_v21 = vld [vmem:[#allocation2] sm:$0xff]   ;;  %v666_v22 = vld [vmem:[#allocation2 + $0x8] sm:$0xff]   ;;  %v667_v23 = vld [vmem:[#allocation2 + $0x10] sm:$0xff]  }
  0x19   :  { %629 = vmatprep.subr.bf16.mxu0 %v665_v21  ;;  %v668_v24 = vld [vmem:[#allocation2 + $0x18] sm:$0xff]   ;;  %v669_v25 = vld [vmem:[#allocation2 + $0x20] sm:$0xff]   ;;  %v670_v26 = vld [vmem:[#allocation2 + $0x28] sm:$0xff]  }
  0x1a   :  { %630 = vmatpush3.bf16.msra.mxu0 %v665_v21  ;;  %v503_v27 = vld [vmem:[%s846_s2] ss:$0 sm:$0xff]  ;;  %v671_v56 = vld [vmem:[#allocation2 + $0x30] sm:$0xff]   ;;  %v672_v57 = vld [vmem:[#allocation2 + $0x38] sm:$0xff]  }
  0x1b   :  { %608 = vmatpush3.bf16.msra.mxu1 %v658_v11  ;;  %631 = vmatprep.subr.bf16.mxu0 %v666_v22  ;;  %v509_v58 = vld [vmem:[%s848_s4] ss:$0 sm:$0xff] }
  0x1c   :  { %609 = vmatprep.subr.bf16.mxu1 %v659_v14 }
  0x1e   :  { %632 = vmatpush3.bf16.msra.mxu0 %v666_v22 }
  0x1f   :  { %602 = vmatmul.mubr.msk.bf16.gmra.mrb[4].mxu0 %vm68_vm0, %v52_v15  ;;  %610 = vmatpush3.bf16.msra.mxu1 %v659_v14 }
  0x20   :  { %611 = vmatprep.subr.bf16.mxu1 %v660_v16  ;;  %633 = vmatprep.subr.bf16.mxu0 %v667_v23 }
  0x22   :  { %634 = vmatpush3.bf16.msra.mxu0 %v667_v23  ;;  %v518_v23 = vld [vmem:[%s850_s6] ss:$0 sm:$0xff] }
  0x23   :  { %612 = vmatpush3.bf16.msra.mxu1 %v660_v16  ;;  %635 = vmatprep.subr.bf16.mxu0 %v668_v24 }
  0x24   :  { %613 = vmatprep.subr.bf16.mxu1 %v661_v17 }
  0x26   :  { %636 = vmatpush3.bf16.msra.mxu0 %v668_v24 }
  0x27   :  { %614 = vmatpush3.bf16.msra.mxu1 %v661_v17  ;;  %637 = vmatprep.subr.bf16.mxu0 %v669_v25 }
  0x28   :  { %615 = vmatprep.subr.bf16.mxu1 %v662_v18 }
  0x2a   :  { %638 = vmatpush3.bf16.msra.mxu0 %v669_v25 }
  0x2b   :  { %616 = vmatpush3.bf16.msra.mxu1 %v662_v18  ;;  %639 = vmatprep.subr.bf16.mxu0 %v670_v26 }
  0x2c   :  { %617 = vmatprep.subr.bf16.mxu1 %v663_v19 }
  0x2e   :  { %640 = vmatpush3.bf16.msra.mxu0 %v670_v26 }
  0x2f   :  { %618 = vmatpush3.bf16.msra.mxu1 %v663_v19  ;;  %641 = vmatprep.subr.bf16.mxu0 %v671_v56 }
  0x30   :  { %619 = vmatprep.subr.bf16.mxu1 %v664_v20 }
  0x32   :  { %642 = vmatpush3.bf16.msra.mxu0 %v671_v56 }
  0x33   :  { %620 = vmatpush3.bf16.msra.mxu1 %v664_v20  ;;  %643 = vmatprep.subr.bf16.mxu0 %v672_v57 }
  0x36   :  { %644 = vmatpush3.bf16.msra.mxu0 %v672_v57 }
  0xea   :  { %v599_v28 = vpop.f32.mrb[0].mxu0 }
  0xeb   :  { %v124_v29 = vadd.f32 %v599_v28, %v503_v27  ;;  %v115_v30 = vpop.f32.mrb[1].mxu0 }
  0xec   :  { %v116_v31 = vadd.f32 %v503_v27, %v115_v30  ;;  %v600_v32 = vpop.f32.mrb[2].mxu0 }
  0xed   :  { %v127_v33 = vadd.f32 %v600_v32, %v503_v27  ;;  %v118_v34 = vpop.f32.mrb[3].mxu0  ;;  %v148_v36 = vmax.f32 %v124_v29, 0.0 }
  0xee   :  { %v119_v35 = vadd.f32 %v503_v27, %v118_v34  ;;  %v146_v38 = vmax.f32 %v116_v31, 0.0 }
  0xef   :  { %v149_v37 = vmax.f32 %v127_v33, 0.0 }
  0xf0   :  { %v147_v39 = vmax.f32 %v119_v35, 0.0 }
  0xf1   :  { %v155_v40 = vpack.c.bf16 %v149_v37, %v148_v36 }
  0xf2   :  { %v603_v41 = vpop.f32.mrb[4].mxu0  ;;  %v154_v42 = vpack.c.bf16 %v147_v39, %v146_v38 }
  0xf3   :  { %v140_v43 = vadd.f32 %v603_v41, %v503_v27  ;;  %v131_v44 = vpop.f32.mrb[5].mxu0 }
  0xf4   :  { %v132_v45 = vadd.f32 %v503_v27, %v131_v44  ;;  %v604_v46 = vpop.f32.mrb[6].mxu0  ;;  %621 = vmatprep.mubr.bf16.mxu1 %v154_v42 }
  0xf5   :  { %v143_v47 = vadd.f32 %v604_v46, %v503_v27  ;;  %v134_v48 = vpop.f32.mrb[7].mxu0  ;;  %622 = vmatmul.mubr.bf16.vlgmr.msra.gmra.mrb[0].mxu1 %v155_v40  ;;  %v152_v50 = vmax.f32 %v140_v43, 0.0 }
  0xf6   :  { %v135_v49 = vadd.f32 %v503_v27, %v134_v48  ;;  %v150_v52 = vmax.f32 %v132_v45, 0.0 }
  0xf7   :  { %v153_v51 = vmax.f32 %v143_v47, 0.0 }
  0xf8   :  { %v151_v53 = vmax.f32 %v135_v49, 0.0 }
  0xf9   :  { %v157_v54 = vpack.c.bf16 %v153_v51, %v152_v50 }
  0xfa   :  { %v156_v55 = vpack.c.bf16 %v151_v53, %v150_v52 }
  0xfc   :  { %625 = vmatprep.mubr.bf16.mxu1 %v156_v55 }
  0xfd   :  { %626 = vmatmul.mubr.bf16.gmra.mrb[4].mxu1 %v157_v54 }
 0x1c8   :  { %v623_v59 = vpop.f32.mrb[0].mxu1 }
 0x1c9   :  { %v272_v60 = vadd.f32 %v623_v59, %v509_v58  ;;  %v263_v61 = vpop.f32.mrb[1].mxu1 }
 0x1ca   :  { %v264_v62 = vadd.f32 %v509_v58, %v263_v61  ;;  %v624_v63 = vpop.f32.mrb[2].mxu1 }
 0x1cb   :  { %v275_v0 = vadd.f32 %v624_v63, %v509_v58  ;;  %v266_v1 = vpop.f32.mrb[3].mxu1  ;;  %v296_v3 = vmax.f32 %v272_v60, 0.0 }
 0x1cc   :  { %v267_v2 = vadd.f32 %v509_v58, %v266_v1  ;;  %v294_v5 = vmax.f32 %v264_v62, 0.0 }
 0x1cd   :  { %v297_v4 = vmax.f32 %v275_v0, 0.0 }
 0x1ce   :  { %v295_v6 = vmax.f32 %v267_v2, 0.0 }
 0x1cf   :  { %v303_v7 = vpack.c.bf16 %v297_v4, %v296_v3 }
 0x1d0   :  { %v302_v8 = vpack.c.bf16 %v295_v6, %v294_v5  ;;  %v627_v9 = vpop.f32.mrb[4].mxu1 }
 0x1d1   :  { %v288_v10 = vadd.f32 %v627_v9, %v509_v58  ;;  %v279_v11 = vpop.f32.mrb[5].mxu1 }
 0x1d2   :  { %v280_v12 = vadd.f32 %v509_v58, %v279_v11  ;;  %v628_v13 = vpop.f32.mrb[6].mxu1  ;;  %645 = vmatprep.mubr.bf16.mxu0 %v302_v8 }
 0x1d3   :  { %v291_v14 = vadd.f32 %v628_v13, %v509_v58  ;;  %v282_v15 = vpop.f32.mrb[7].mxu1  ;;  %646 = vmatmul.mubr.bf16.vlgmr.msra.gmra.mrb[8].mxu0 %v303_v7  ;;  %v300_v17 = vmax.f32 %v288_v10, 0.0 }
 0x1d4   :  { %v283_v16 = vadd.f32 %v509_v58, %v282_v15  ;;  %v298_v19 = vmax.f32 %v280_v12, 0.0 }
 0x1d5   :  { %v301_v18 = vmax.f32 %v291_v14, 0.0 }
 0x1d6   :  { %v299_v20 = vmax.f32 %v283_v16, 0.0 }
 0x1d7   :  { %v305_v21 = vpack.c.bf16 %v301_v18, %v300_v17 }
 0x1d8   :  { %v304_v22 = vpack.c.bf16 %v299_v20, %v298_v19 }
 0x1da   :  { %649 = vmatprep.mubr.bf16.mxu0 %v304_v22 }
 0x1db   :  { %650 = vmatmul.mubr.bf16.gmra.mrb[12].mxu0 %v305_v21 }
 0x2a6   :  { %v647_v24 = vpop.f32.mrb[8].mxu0 }
 0x2a7   :  { %v420_v25 = vadd.f32 %v647_v24, %v518_v23  ;;  %v411_v26 = vpop.f32.mrb[9].mxu0 }
 0x2a8   :  { %v412_v27 = vadd.f32 %v518_v23, %v411_v26  ;;  %v648_v28 = vpop.f32.mrb[10].mxu0 }
 0x2a9   :  { %673 = vtanh.f32 %v420_v25  ;;  %v423_v29 = vadd.f32 %v648_v28, %v518_v23  ;;  %v414_v30 = vpop.f32.mrb[11].mxu0 }
 0x2aa   :  { %675 = vtanh.f32 %v412_v27  ;;  %v415_v31 = vadd.f32 %v518_v23, %v414_v30 }
 0x2ab   :  { %677 = vtanh.f32 %v423_v29 }
 0x2ac   :  { %679 = vtanh.f32 %v415_v31 }
 0x2ae   :  { %v651_v32 = vpop.f32.mrb[12].mxu0 }
 0x2af   :  { %v436_v33 = vadd.f32 %v651_v32, %v518_v23  ;;  %v427_v34 = vpop.f32.mrb[13].mxu0 }
 0x2b0   :  { %v428_v35 = vadd.f32 %v518_v23, %v427_v34  ;;  %v652_v36 = vpop.f32.mrb[14].mxu0 }
 0x2b1   :  { %681 = vtanh.f32 %v436_v33  ;;  %v439_v37 = vadd.f32 %v652_v36, %v518_v23  ;;  %v430_v38 = vpop.f32.mrb[15].mxu0 }
 0x2b2   :  { %683 = vtanh.f32 %v428_v35  ;;  %v431_v39 = vadd.f32 %v518_v23, %v430_v38 }
 0x2b3   :  { %v674_v40 = vpop.eup %673  ;;  %685 = vtanh.f32 %v439_v37 }
 0x2b4   :  { %v676_v41 = vpop.eup %675  ;;  %687 = vtanh.f32 %v431_v39  ;;  %v452_v44 = vmul.f32 2.0, %v674_v40 }
 0x2b5   :  { %v678_v42 = vpop.eup %677  ;;  %v450_v46 = vmul.f32 2.0, %v676_v41 }
 0x2b6   :  { %v680_v43 = vpop.eup %679  ;;  %v453_v45 = vmul.f32 2.0, %v678_v42 }
 0x2b7   :  { %v451_v47 = vmul.f32 2.0, %v680_v43 }
 0x2b8   :  { %v551_v48 = vpack.c.bf16 %v453_v45, %v452_v44 }
 0x2b9   :  { %v546_v49 = vpack.c.bf16 %v451_v47, %v450_v46 }
 0x2ba   :  { %563 = vst [vmem:[%s851_s7 + $0x8] sm:$0xff] %v551_v48  }
 0x2bb   :  { %v682_v50 = vpop.eup %681  ;;  %547 = vst [vmem:[%s851_s7] sm:$0xff] %v546_v49  }
 0x2bc   :  { %v684_v51 = vpop.eup %683  ;;  %v456_v54 = vmul.f32 2.0, %v682_v50 }
 0x2bd   :  { %v686_v52 = vpop.eup %685  ;;  %v454_v56 = vmul.f32 2.0, %v684_v51 }
 0x2be   :  { %v688_v53 = vpop.eup %687  ;;  %v457_v55 = vmul.f32 2.0, %v686_v52 }
 0x2bf   :  { %v455_v57 = vmul.f32 2.0, %v688_v53 }
 0x2c0   :  { %v561_v58 = vpack.c.bf16 %v457_v55, %v456_v54 }
 0x2c1   :  { %v556_v59 = vpack.c.bf16 %v455_v57, %v454_v56 }
 0x2c2   :  { %565 = vst [vmem:[%s851_s7 + $0x18] sm:$0xff] %v561_v58  }
 0x2c3   :  { %564 = vst [vmem:[%s851_s7 + $0x10] sm:$0xff] %v556_v59  }
 0x2c4   :  { %502 = vsyncpa [#allocation3], 1 }

</bundles_post_ra>
